<compile_context>
chip_gen: v7x
topology: tpu7x:2x2x1
jax: 0.10.0
libtpu: 0.0.40
codegen_flags: <defaults>
</compile_context>

<pallas_src>
import functools

import jax
import jax.numpy as jnp
from jax.experimental import pallas as pl
from jax.experimental.pallas import tpu as pltpu


def _tv_kernel(x_ref, o_ref, acc_ref, carry_ref, *, img_h, inv_numel):
    """One (tile_rows, W) block of the flattened (C*H, W) patch.

    x_ref:     (tile_rows, W) input block (VMEM)
    o_ref:     (1, 1) scalar output (SMEM)
    acc_ref:   (1,)  f32 running sum (SMEM scratch, persists across grid)
    carry_ref: (1, W) last row of the previous block (VMEM scratch)
    """
    i = pl.program_id(0)
    tile_rows, w = x_ref.shape

    @pl.when(i == 0)
    def _init():
        acc_ref[0] = jnp.float32(0.0)

    x = x_ref[...].astype(jnp.float32)
    eps = jnp.float32(1e-6)

    lane = jax.lax.broadcasted_iota(jnp.int32, (tile_rows, w), 1)
    local_r = jax.lax.broadcasted_iota(jnp.int32, (tile_rows, w), 0)
    global_r = local_r + i * tile_rows

    # Width-direction diffs: roll on the lane axis (shift w-1 == shift -1),
    # then zero the wrap-around column (lane == w-1).
    x_next_lane = pltpu.roll(x, w - 1, axis=1)
    dw = jnp.where(lane < w - 1, jnp.abs(x_next_lane - x + eps), 0.0)

    # Height-direction diffs within the tile: roll on the sublane axis.
    # Invalid rows: the tile's last row (its neighbor lives in the next tile,
    # handled via the carry below) and channel seams (last H row of a channel).
    x_next_row = pltpu.roll(x, tile_rows - 1, axis=0)
    h_valid = jnp.logical_and(local_r != tile_rows - 1,
                              (global_r + 1) % img_h != 0)
    dh = jnp.where(h_valid, jnp.abs(x_next_row - x + eps), 0.0)

    # Single fused reduction for both diff directions.
    acc_ref[0] += jnp.sum(dw + dh)

    # Height diff across the tile boundary (first row of this tile vs. carried
    # last row of the previous tile), skipped when the boundary is a channel
    # seam or this is the first tile.
    @pl.when(jnp.logical_and(i > 0, (i * tile_rows) % img_h != 0))
    def _boundary():
        acc_ref[0] += jnp.sum(jnp.abs(x[0:1, :] - carry_ref[...] + eps))

    carry_ref[...] = x[tile_rows - 1:tile_rows, :]

    @pl.when(i == pl.num_programs(0) - 1)
    def _finalize():
        # Divide-by-numel folded into a single constant multiply.
        o_ref[0, 0] = acc_ref[0] * jnp.float32(inv_numel)


def _pick_tile_rows(total_rows: int, w: int,
                    budget_bytes: int = 2 * 1024 * 1024) -> int:
    """Largest row tile (multiple of 8 dividing total_rows) whose f32 working
    set (block + two rolled/diff temporaries, lane-padded) fits the budget.
    The small budget keeps double-buffered residency safe on v5e/v7x."""
    row_bytes = 4 * ((w + 127) // 128) * 128

    def fits(tr):
        return 3 * tr * row_bytes <= budget_bytes

    if fits(total_rows):
        return total_rows
    best = None
    tr = 8
    while tr <= total_rows:
        if total_rows % tr == 0 and fits(tr):
            best = tr
        tr += 8
    return best if best is not None else total_rows


def total_variation(adv_patch: jax.Array, *, tile_rows: int | None = None) -> jax.Array:
    """Pallas implementation of TotalVariation.forward. Returns a scalar."""
    assert adv_patch.ndim == 3, "expected (C, H, W) patch"
    c, h, w = adv_patch.shape
    total_rows = c * h
    x2d = adv_patch.reshape(total_rows, w)  # free metadata reshape in XLA

    if tile_rows is None:
        tile_rows = _pick_tile_rows(total_rows, w)
    assert total_rows % tile_rows == 0, "tile_rows must divide C*H"
    assert tile_rows == total_rows or tile_rows % 8 == 0, (
        "tiled blocks need sublane-aligned (multiple-of-8) row tiles")
    grid = (total_rows // tile_rows,)
    inv_numel = 1.0 / float(c * h * w)

    kernel = functools.partial(_tv_kernel, img_h=h, inv_numel=inv_numel)
    out = pl.pallas_call(
        kernel,
        out_shape=jax.ShapeDtypeStruct((1, 1), jnp.float32),
        grid_spec=pltpu.PrefetchScalarGridSpec(
            num_scalar_prefetch=0,
            grid=grid,
            in_specs=[pl.BlockSpec((tile_rows, w), lambda i: (i, 0))],
            out_specs=pl.BlockSpec(memory_space=pltpu.MemorySpace.SMEM),
            scratch_shapes=[
                pltpu.SMEM((1,), jnp.float32),          # running sum
                pltpu.VMEM((1, w), jnp.float32),        # carried last row
            ],
        ),
        compiler_params=pltpu.CompilerParams(
            dimension_semantics=("arbitrary",)),        # reduction grid axis
    )(x2d)
    return out[0, 0]


def _total_variation_ref(x: jax.Array) -> jax.Array:
    x = x.astype(jnp.float32)
    tv1 = jnp.sum(jnp.abs(x[:, :, 1:] - x[:, :, :-1] + 1e-06))
    tv2 = jnp.sum(jnp.abs(x[:, 1:, :] - x[:, :-1, :] + 1e-06))
    return (tv1 + tv2) / x.size


if __name__ == "__main__":
    key = jax.random.PRNGKey(0)
    k1, k2 = jax.random.split(key)

    # Small patch consistent with the module's usage: (C, H, W) = (4, 16, 16).
    patch_small = jax.random.uniform(k1, (4, 16, 16), dtype=jnp.float32)
    res_small = jax.block_until_ready(total_variation(patch_small))
    ref_small = _total_variation_ref(patch_small)
    assert jnp.allclose(res_small, ref_small, rtol=1e-5, atol=1e-5), (
        f"small patch mismatch: pallas={res_small} ref={ref_small}")

    # Taller patch with a forced small row tile to exercise the multi-tile
    # grid, the carried-row boundary diff, and the channel-seam masking.
    patch_tiled = jax.random.uniform(k2, (3, 32, 16), dtype=jnp.float32)
    res_tiled = jax.block_until_ready(total_variation(patch_tiled, tile_rows=16))
    ref_tiled = _total_variation_ref(patch_tiled)
    assert jnp.allclose(res_tiled, ref_tiled, rtol=1e-5, atol=1e-5), (
        f"tiled patch mismatch: pallas={res_tiled} ref={ref_tiled}")

    print("KERNEL_OK")
</pallas_src>

<mosaic_0001>
module attributes {stable_mosaic.version = 11 : i64} {
  func.func @_tv_kernel(%arg0: i32, %arg1: memref<64x16xf32, #tpu.memory_space<vmem>>, %arg2: memref<1x1xf32, #tpu.memory_space<smem>>, %arg3: memref<1xf32, #tpu.memory_space<smem>>, %arg4: memref<1x16xf32, #tpu.memory_space<vmem>>) attributes {dimension_semantics = [#tpu.dimension_semantics<arbitrary>], iteration_bounds = array<i64: 1>, scalar_prefetch = 0 : i64, scratch_operands = 2 : i64, tpu.core_type = #tpu.core_type<tc>, window_params = [{transform_indices = @transform_0, window_bounds = array<i64: 64, 16>}, {transform_indices = @transform_1, window_bounds = array<i64: 1, 1>}]} {
    %c0_i32 = arith.constant 0 : i32
    %0 = arith.cmpi eq, %arg0, %c0_i32 : i32
    %1 = arith.extui %0 : i1 to i32
    %c0_i32_0 = arith.constant 0 : i32
    %2 = arith.cmpi ne, %1, %c0_i32_0 : i32
    scf.if %2 {
      %cst_31 = arith.constant 0.000000e+00 : f32
      %c0_32 = arith.constant 0 : index
      %77 = memref.load %arg3[%c0_32] : memref<1xf32, #tpu.memory_space<smem>>
      memref.store %cst_31, %arg3[%c0_32] : memref<1xf32, #tpu.memory_space<smem>>
    } else {
    }
    %c0 = arith.constant 0 : index
    %c0_1 = arith.constant 0 : index
    %3 = vector.load %arg1[%c0, %c0_1] : memref<64x16xf32, #tpu.memory_space<vmem>>, vector<64x16xf32>
    %4 = tpu.iota {dimensions = array<i32: 1>} : vector<64x16xi32>
    %5 = tpu.iota {dimensions = array<i32: 0>} : vector<64x16xi32>
    %c64_i32 = arith.constant 64 : i32
    %6 = arith.muli %arg0, %c64_i32 : i32
    %7 = vector.broadcast %6 : i32 to vector<64x16xi32>
    %8 = arith.addi %5, %7 : vector<64x16xi32>
    %c15_i32 = arith.constant 15 : i32
    %9 = tpu.dynamic_rotate %3 by %c15_i32 dim 1 : vector<64x16xf32>, i32 -> vector<64x16xf32>
    %c15_i32_2 = arith.constant 15 : i32
    %10 = vector.broadcast %c15_i32_2 : i32 to vector<64x16xi32>
    %11 = arith.cmpi slt, %4, %10 : vector<64x16xi32>
    %12 = arith.subf %9, %3 : vector<64x16xf32>
    %cst = arith.constant 9.99999997E-7 : f32
    %13 = vector.broadcast %cst : f32 to vector<64x16xf32>
    %14 = arith.addf %12, %13 : vector<64x16xf32>
    %15 = math.absf %14 : vector<64x16xf32>
    %cst_3 = arith.constant 0.000000e+00 : f32
    %16 = vector.broadcast %cst_3 : f32 to vector<64x16xf32>
    %17 = arith.select %11, %15, %16 : vector<64x16xi1>, vector<64x16xf32>
    %c63_i32 = arith.constant 63 : i32
    %18 = tpu.dynamic_rotate %3 by %c63_i32 dim 0 : vector<64x16xf32>, i32 -> vector<64x16xf32>
    %c63_i32_4 = arith.constant 63 : i32
    %19 = vector.broadcast %c63_i32_4 : i32 to vector<64x16xi32>
    %20 = arith.cmpi ne, %5, %19 : vector<64x16xi32>
    %c1_i32 = arith.constant 1 : i32
    %21 = vector.broadcast %c1_i32 : i32 to vector<64x16xi32>
    %22 = arith.addi %8, %21 : vector<64x16xi32>
    %c16_i32 = arith.constant 16 : i32
    %c0_i32_5 = arith.constant 0 : i32
    %23 = arith.cmpi eq, %c16_i32, %c0_i32_5 : i32
    %c1_i32_6 = arith.constant 1 : i32
    %24 = arith.select %23, %c1_i32_6, %c16_i32 : i32
    %25 = vector.broadcast %24 : i32 to vector<64x16xi32>
    %26 = arith.remsi %22, %25 : vector<64x16xi32>
    %c0_i32_7 = arith.constant 0 : i32
    %27 = vector.broadcast %c0_i32_7 : i32 to vector<64x16xi32>
    %28 = arith.cmpi ne, %26, %27 : vector<64x16xi32>
    %c0_i32_8 = arith.constant 0 : i32
    %29 = vector.broadcast %c0_i32_8 : i32 to vector<64x16xi32>
    %30 = arith.cmpi slt, %26, %29 : vector<64x16xi32>
    %c0_i32_9 = arith.constant 0 : i32
    %31 = arith.cmpi slt, %24, %c0_i32_9 : i32
    %32 = vector.broadcast %31 : i1 to vector<64x16xi1>
    %33 = vector.broadcast %32 : vector<64x16xi1> to vector<64x16xi1>
    %34 = arith.xori %30, %33 : vector<64x16xi1>
    %35 = arith.andi %34, %28 : vector<64x16xi1>
    %36 = vector.broadcast %24 : i32 to vector<64x16xi32>
    %37 = arith.addi %26, %36 : vector<64x16xi32>
    %38 = arith.select %35, %37, %26 : vector<64x16xi1>, vector<64x16xi32>
    %c0_i32_10 = arith.constant 0 : i32
    %39 = vector.broadcast %c0_i32_10 : i32 to vector<64x16xi32>
    %40 = arith.cmpi ne, %38, %39 : vector<64x16xi32>
    %41 = arith.andi %20, %40 : vector<64x16xi1>
    %42 = arith.subf %18, %3 : vector<64x16xf32>
    %cst_11 = arith.constant 9.99999997E-7 : f32
    %43 = vector.broadcast %cst_11 : f32 to vector<64x16xf32>
    %44 = arith.addf %42, %43 : vector<64x16xf32>
    %45 = math.absf %44 : vector<64x16xf32>
    %cst_12 = arith.constant 0.000000e+00 : f32
    %46 = vector.broadcast %cst_12 : f32 to vector<64x16xf32>
    %47 = arith.select %41, %45, %46 : vector<64x16xi1>, vector<64x16xf32>
    %c0_13 = arith.constant 0 : index
    %48 = memref.load %arg3[%c0_13] : memref<1xf32, #tpu.memory_space<smem>>
    %49 = arith.addf %17, %47 : vector<64x16xf32>
    %50 = vector.shape_cast %49 : vector<64x16xf32> to vector<1x64x16xf32>
    %cst_14 = arith.constant dense<0.000000e+00> : vector<1xf32>
    %51 = vector.multi_reduction <add>, %50, %cst_14 [1, 2] : vector<1x64x16xf32> to vector<1xf32>
    %52 = vector.shape_cast %51 : vector<1xf32> to vector<1x1x1xf32>
    %53 = vector.extract %52[0, 0, 0] : f32 from vector<1x1x1xf32>
    %54 = arith.addf %48, %53 : f32
    %c0_15 = arith.constant 0 : index
    %55 = memref.load %arg3[%c0_15] : memref<1xf32, #tpu.memory_space<smem>>
    memref.store %54, %arg3[%c0_15] : memref<1xf32, #tpu.memory_space<smem>>
    %c0_i32_16 = arith.constant 0 : i32
    %56 = arith.cmpi sgt, %arg0, %c0_i32_16 : i32
    %c64_i32_17 = arith.constant 64 : i32
    %57 = arith.muli %arg0, %c64_i32_17 : i32
    %c16_i32_18 = arith.constant 16 : i32
    %c0_i32_19 = arith.constant 0 : i32
    %58 = arith.cmpi eq, %c16_i32_18, %c0_i32_19 : i32
    %c1_i32_20 = arith.constant 1 : i32
    %59 = arith.select %58, %c1_i32_20, %c16_i32_18 : i32
    %60 = arith.remsi %57, %59 : i32
    %c0_i32_21 = arith.constant 0 : i32
    %61 = arith.cmpi ne, %60, %c0_i32_21 : i32
    %c0_i32_22 = arith.constant 0 : i32
    %62 = arith.cmpi slt, %60, %c0_i32_22 : i32
    %c0_i32_23 = arith.constant 0 : i32
    %63 = arith.cmpi slt, %59, %c0_i32_23 : i32
    %64 = arith.xori %62, %63 : i1
    %65 = arith.andi %64, %61 : i1
    %66 = arith.addi %60, %59 : i32
    %67 = arith.select %65, %66, %60 : i32
    %c0_i32_24 = arith.constant 0 : i32
    %68 = arith.cmpi ne, %67, %c0_i32_24 : i32
    %69 = arith.andi %56, %68 : i1
    %70 = arith.extui %69 : i1 to i32
    %cst_25 = arith.constant 9.99999997E-7 : f32
    %c0_i32_26 = arith.constant 0 : i32
    %71 = arith.cmpi ne, %70, %c0_i32_26 : i32
    scf.if %71 {
      %c0_31 = arith.constant 0 : index
      %77 = memref.load %arg3[%c0_31] : memref<1xf32, #tpu.memory_space<smem>>
      %78 = vector.extract_strided_slice %3 {offsets = [0, 0], sizes = [1, 16], strides = [1, 1]} : vector<64x16xf32> to vector<1x16xf32>
      %c0_32 = arith.constant 0 : index
      %c0_33 = arith.constant 0 : index
      %79 = vector.load %arg4[%c0_32, %c0_33] : memref<1x16xf32, #tpu.memory_space<vmem>>, vector<1x16xf32>
      %80 = arith.subf %78, %79 : vector<1x16xf32>
      %81 = vector.broadcast %cst_25 : f32 to vector<1x16xf32>
      %82 = arith.addf %80, %81 : vector<1x16xf32>
      %83 = math.absf %82 : vector<1x16xf32>
      %84 = vector.shape_cast %83 : vector<1x16xf32> to vector<1x1x16xf32>
      %cst_34 = arith.constant dense<0.000000e+00> : vector<1xf32>
      %85 = vector.multi_reduction <add>, %84, %cst_34 [1, 2] : vector<1x1x16xf32> to vector<1xf32>
      %86 = vector.shape_cast %85 : vector<1xf32> to vector<1x1x1xf32>
      %87 = vector.extract %86[0, 0, 0] : f32 from vector<1x1x1xf32>
      %88 = arith.addf %77, %87 : f32
      %c0_35 = arith.constant 0 : index
      %89 = memref.load %arg3[%c0_35] : memref<1xf32, #tpu.memory_space<smem>>
      memref.store %88, %arg3[%c0_35] : memref<1xf32, #tpu.memory_space<smem>>
    } else {
    }
    %72 = vector.extract_strided_slice %3 {offsets = [63, 0], sizes = [1, 16], strides = [1, 1]} : vector<64x16xf32> to vector<1x16xf32>
    %c0_27 = arith.constant 0 : index
    %c0_28 = arith.constant 0 : index
    %73 = vector.load %arg4[%c0_27, %c0_28] : memref<1x16xf32, #tpu.memory_space<vmem>>, vector<1x16xf32>
    tpu.vector_store %arg4[%c0_27, %c0_28], %72 {strides = array<i32>} : memref<1x16xf32, #tpu.memory_space<vmem>>, vector<1x16xf32>,
    %c0_i32_29 = arith.constant 0 : i32
    %74 = arith.cmpi eq, %arg0, %c0_i32_29 : i32
    %75 = arith.extui %74 : i1 to i32
    %c0_i32_30 = arith.constant 0 : i32
    %76 = arith.cmpi ne, %75, %c0_i32_30 : i32
    scf.if %76 {
      %c0_31 = arith.constant 0 : index
      %77 = memref.load %arg3[%c0_31] : memref<1xf32, #tpu.memory_space<smem>>
      %cst_32 = arith.constant 9.765625E-4 : f32
      %78 = arith.mulf %77, %cst_32 : f32
      %c0_33 = arith.constant 0 : index
      %c0_34 = arith.constant 0 : index
      %79 = memref.load %arg2[%c0_33, %c0_34] : memref<1x1xf32, #tpu.memory_space<smem>>
      memref.store %78, %arg2[%c0_33, %c0_34] : memref<1x1xf32, #tpu.memory_space<smem>>
    } else {
    }
    return
  }
  func.func @transform_0(%arg0: i32) -> (i32, i32) {
    %c0_i32 = arith.constant 0 : i32
    %c0_i32_0 = arith.constant 0 : i32
    return %arg0, %c0_i32 : i32, i32
  }
  func.func @transform_1(%arg0: i32) -> (i32, i32) {
    %c0_i32 = arith.constant 0 : i32
    %c0_i32_0 = arith.constant 0 : i32
    %c0_i32_1 = arith.constant 0 : i32
    return %c0_i32, %c0_i32_0 : i32, i32
  }
}

</mosaic_0001>

<bundles_post_ra>
// kernel: tpu_custom_call.1
= control target key start
LH: loop header
LB: loop body
LE: loop exit
PB: predicated region body
PF: predicated region fallthrough
CT: control target
= control target key end

     0   :  { %s480_s10 = smov 16   ;;  %s677_s0 = inlined_call_operand.vmem [shape: f32[64,16], index: 0, kind: input, shape index: {}]   ;;  %s678_s1 = inlined_call_operand.hbm [shape: f32[1,1], index: 1, kind: output, shape index: {}]  }
   0x1   :  { %v497_v0 = vld [vmem:[%s677_s0] sm:$0xff]  ;;  %v502_v1 = vld [vmem:[%s677_s0 + $0x10] sm:$0xff]  ;;  %v511_v2 = vld [vmem:[%s677_s0 + $0x8] sm:$0xff] }
   0x2   :  { %45 = vrot.lane.b32.xlu0 %v497_v0, %s480_s10  ;;  %51 = vrot.lane.b32.xlu1 %v502_v1, %s480_s10  ;;  %v516_v3 = vld [vmem:[%s677_s0 + $0x18] sm:$0xff] }
   0x3   :  { %v521_v4 = vld [vmem:[%s677_s0 + $0x38] sm:$0xff] }
   0x4   :  { %6 = vsyncpa [#allocation5], 0  ;;  %v530_v5 = vld [vmem:[%s677_s0 + $0x20] sm:$0xff]  ;;  %v535_v6 = vld [vmem:[%s677_s0 + $0x28] sm:$0xff]  ;;  %s481_s23 = smov 1   ;;  %vm44_vm0 = vcmask 1047680  }
   0x5   :  { %v544_v7 = vld [vmem:[%s677_s0 + $0x30] sm:$0xff]  ;;  %s482_s0 = smov 127   ;;  %vm376_vm5 = vcmask 130048   ;;  %s468_s28 = scalar_lea.hbm %s678_s1, 16 }
   0x6   :  { %48 = vrot.lane.b32.xlu0 %v511_v2, %s480_s10  ;;  %54 = vrot.lane.b32.xlu1 %v516_v3, %s480_s10  ;;  %p469_p0 = scmp.ne.s32.totalorder %s678_s1, %s468_s28  ;;  %p472_p1 = scmp.lt.u32.totalorder %s468_s28, %s678_s1 }
   0x8   :  { %p474_p2 = pnand %p472_p1, %p469_p0 }
   0xa   :  { %57 = vrot.lane.b32.xlu0 %v530_v5, %s480_s10  ;;  %60 = vrot.lane.b32.xlu1 %v535_v6, %s480_s10 }
   0xe   :  { %63 = vrot.lane.b32.xlu0 %v544_v7, %s480_s10  ;;  %66 = vrot.lane.b32.xlu1 %v521_v4, %s480_s10 }
  0x12   :  { %104 = vrot.lane.b32.xlu1 %v511_v2, %s481_s23  ;;  %102 = vrot.lane.b32.xlu0 %v497_v0, %s481_s23 }
  0x16   :  { %106 = vrot.lane.b32.xlu1 %v502_v1, %s481_s23 }
  0x1a   :  { %108 = vrot.lane.b32.xlu1 %v516_v3, %s481_s23 }
  0x74   :  { %v46_v8 = vpop.permute.xlu0 %45  ;;  %v52_v9 = vpop.permute.xlu1 %51 }
  0x75   :  { %v47_v10 = vsel %vm44_vm0, %v46_v8, %v497_v0  ;;  %v53_v11 = vsel %vm44_vm0, %v52_v9, %v502_v1 }
  0x76   :  { %69 = vrot.lane.b32.xlu0 %v47_v10, %s480_s10 }
  0x78   :  { %v49_v12 = vpop.permute.xlu0 %48  ;;  %v55_v13 = vpop.permute.xlu1 %54 }
  0x79   :  { %v50_v14 = vsel %vm44_vm0, %v49_v12, %v511_v2  ;;  %v56_v15 = vsel %vm44_vm0, %v55_v13, %v516_v3 }
  0x7a   :  { %73 = vrot.lane.b32.xlu0 %v53_v11, %s480_s10  ;;  %71 = vrot.lane.b32.xlu1 %v50_v14, %s480_s10 }
  0x7c   :  { %v58_v16 = vpop.permute.xlu0 %57  ;;  %v61_v18 = vpop.permute.xlu1 %60 }
  0x7d   :  { %v59_v17 = vsel %vm44_vm0, %v58_v16, %v530_v5  ;;  %v62_v19 = vsel %vm44_vm0, %v61_v18, %v535_v6  ;;  %v23_v16 = vlaneseq  ;;  %v192_v18 = vrot.slane %v502_v1, 1 }
  0x7e   :  { %75 = vrot.lane.b32.xlu0 %v56_v15, %s480_s10  ;;  %110 = vrot.lane.b32.xlu1 %v530_v5, %s481_s23 }
  0x80   :  { %v64_v20 = vpop.permute.xlu0 %63  ;;  %v67_v22 = vpop.permute.xlu1 %66 }
  0x81   :  { %v65_v21 = vsel %vm44_vm0, %v64_v20, %v544_v7  ;;  %v68_v23 = vsel %vm44_vm0, %v67_v22, %v521_v4  ;;  %v190_v22 = vrot.slane %v497_v0, 1 }
  0x82   :  { %77 = vrot.lane.b32.xlu0 %v59_v17, %s480_s10  ;;  %112 = vrot.lane.b32.xlu1 %v535_v6, %s481_s23  ;;  %v26_v17 = vshrl.u32 %v23_v16, 7 }
  0x84   :  { %v105_v24 = vpop.permute.xlu1 %104  ;;  %v103_v26 = vpop.permute.xlu0 %102  ;;  %vm198_vm1 = vcmp.lt.s32.totalorder %v26_v17, 7  ;;  %v27_v20 = vadd.s32 8, %v26_v17 }
  0x86   :  { %79 = vrot.lane.b32.xlu0 %v62_v19, %s480_s10  ;;  %114 = vrot.lane.b32.xlu1 %v544_v7, %s481_s23  ;;  %v191_v19 = vrot.slane %v511_v2, 1 }
  0x88   :  { %v107_v25 = vpop.permute.xlu1 %106 }
  0x8a   :  { %81 = vrot.lane.b32.xlu0 %v65_v21, %s480_s10  ;;  %116 = vrot.lane.b32.xlu1 %v521_v4, %s481_s23  ;;  %v204_v21 = vsel %vm198_vm1, %v191_v19, %v192_v18 }
  0x8c   :  { %v109_v27 = vpop.permute.xlu1 %108 }
  0x8e   :  { %83 = vrot.lane.b32.xlu0 %v68_v23, %s480_s10  ;;  %v336_v23 = vsub.f32 %v204_v21, %v511_v2 }
  0xe8   :  { %v70_v28 = vpop.permute.xlu0 %69 }
  0xe9   :  { %v85_v29 = vsel %vm44_vm0, %v70_v28, %v497_v0  ;;  %v344_v28 = vadd.f32 1e-06, %v336_v23 }
  0xea   :  { %v126_v30 = vsub.f32 %v85_v29, %v103_v26  ;;  %v194_v26 = vrot.slane %v530_v5, 1 }
  0xec   :  { %v134_v31 = vadd.f32 1e-06, %v126_v30  ;;  %v72_v32 = vpop.permute.xlu1 %71  ;;  %v74_v33 = vpop.permute.xlu0 %73 }
  0xed   :  { %v86_v34 = vsel %vm44_vm0, %v72_v32, %v511_v2  ;;  %v87_v35 = vsel %vm44_vm0, %v74_v33, %v502_v1  ;;  %v195_v2 = vrot.slane %v535_v6, 1 }
  0xee   :  { %v142_v36 = vand.u32 2147483647, %v134_v31  ;;  %v127_v37 = vsub.f32 %v86_v34, %v105_v24  ;;  %v128_v38 = vsub.f32 %v87_v35, %v107_v25  ;;  %v216_v24 = vadd.s32 1, %v27_v20 }
  0xef   :  { %v193_v25 = vrot.slane %v516_v3, 1  ;;  %v29_v31 = vadd.s32 24, %v26_v17  ;;  %v196_v34 = vrot.slane %v544_v7, 1  ;;  %v627_v35 = vand.u32 127, %v23_v16 }
  0xf0   :  { %v135_v39 = vadd.f32 1e-06, %v127_v37  ;;  %v136_v40 = vadd.f32 1e-06, %v128_v38  ;;  %158 = vrot.lane.b32.xlu0 %v142_v36, %s482_s0  ;;  %v76_v41 = vpop.permute.xlu0 %75  ;;  %v111_v42 = vpop.permute.xlu1 %110  ;;  %v234_v29 = vand.u32 15, %v216_v24 }
  0xf1   :  { %v88_v43 = vsel %vm44_vm0, %v76_v41, %v516_v3  ;;  %v203_v30 = vsel %vm198_vm1, %v192_v18, %v193_v25  ;;  %v202_v33 = vsel %vm198_vm1, %v193_v25, %v194_v26  ;;  %v352_v36 = vand.u32 2147483647, %v344_v28 }
  0xf2   :  { %v143_v44 = vand.u32 2147483647, %v135_v39  ;;  %v144_v45 = vand.u32 2147483647, %v136_v40  ;;  %v129_v46 = vsub.f32 %v88_v43, %v109_v27  ;;  %v205_v27 = vsel %vm198_vm1, %v190_v22, %v191_v19 }
  0xf3   :  { %v335_v32 = vsub.f32 %v205_v27, %v497_v0  ;;  %v337_v37 = vsub.f32 %v203_v30, %v502_v1  ;;  %vm320_vm2 = vcmp.ne.s32.totalorder %v234_v29, 0  ;;  %v218_v38 = vadd.s32 1, %v29_v31 }
  0xf4   :  { %v137_v47 = vadd.f32 1e-06, %v129_v46  ;;  %160 = vrot.lane.b32.xlu1 %v143_v44, %s482_s0  ;;  %162 = vrot.lane.b32.xlu0 %v144_v45, %s482_s0  ;;  %v78_v48 = vpop.permute.xlu0 %77  ;;  %v113_v49 = vpop.permute.xlu1 %112  ;;  %v338_v39 = vsub.f32 %v202_v33, %v516_v3  ;;  %v200_v0 = vsel %vm198_vm1, %v195_v2, %v196_v34  ;;  %v201_v43 = vsel %vm198_vm1, %v194_v26, %v195_v2 }
  0xf5   :  { %v89_v50 = vsel %vm44_vm0, %v78_v48, %v530_v5  ;;  %v343_v41 = vadd.f32 1e-06, %v335_v32  ;;  %vm93_vm3 = vcmp.lt.s32.totalorder %v627_v35, 15  ;;  %v360_v44 = vsel %vm320_vm2, %v352_v36, 0.0 }
  0xf6   :  { %v145_v51 = vand.u32 2147483647, %v137_v47  ;;  %v130_v52 = vsub.f32 %v89_v50, %v111_v42  ;;  %v31_v42 = vadd.s32 40, %v26_v17  ;;  %v345_v45 = vadd.f32 1e-06, %v337_v37 }
  0xf7   :  { %v248_v46 = vand.u32 15, %v218_v38  ;;  %v346_v47 = vadd.f32 1e-06, %v338_v39  ;;  %v340_v48 = vsub.f32 %v200_v0, %v535_v6  ;;  %v197_v1 = vrot.slane %v521_v4, 1 }
  0xf8   :  { %v138_v53 = vadd.f32 1e-06, %v130_v52  ;;  %164 = vrot.lane.b32.xlu1 %v145_v51, %s482_s0  ;;  %v80_v54 = vpop.permute.xlu0 %79  ;;  %v115_v56 = vpop.permute.xlu1 %114  ;;  %v339_v3 = vsub.f32 %v201_v43, %v530_v5  ;;  %v220_v51 = vadd.s32 1, %v31_v42 }
  0xf9   :  { %v90_v55 = vsel %vm44_vm0, %v80_v54, %v535_v6  ;;  %v33_v54 = vadd.s32 56, %v26_v17  ;;  %vm322_vm4 = vcmp.ne.s32.totalorder %v248_v46, 0  ;;  %v348_v6 = vadd.f32 1e-06, %v340_v48 }
  0xfa   :  { %v146_v57 = vand.u32 2147483647, %v138_v53  ;;  %v131_v58 = vsub.f32 %v90_v55, %v113_v49  ;;  %v351_v49 = vand.u32 2147483647, %v343_v41  ;;  %v262_v5 = vand.u32 15, %v220_v51 }
  0xfb   :  { %vm214_vm7 = vcmp.ne.s32.totalorder %v33_v54, 63 }
  0xfc   :  { %v139_v59 = vadd.f32 1e-06, %v131_v58  ;;  %166 = vrot.lane.b32.xlu0 %v146_v57, %s482_s0  ;;  %v82_v60 = vpop.permute.xlu0 %81  ;;  %v117_v8 = vpop.permute.xlu1 %116  ;;  %v354_v58 = vand.u32 2147483647, %v346_v47  ;;  %vm324_vm6 = vcmp.ne.s32.totalorder %v262_v5, 0 }
  0xfd   :  { %v91_v61 = vsel %vm44_vm0, %v82_v60, %v544_v7 }
  0xfe   :  { %v147_v62 = vand.u32 2147483647, %v139_v59  ;;  %v132_v63 = vsub.f32 %v91_v61, %v115_v56  ;;  %v353_v56 = vand.u32 2147483647, %v345_v45  ;;  %v199_v59 = vsel %vm198_vm1, %v196_v34, %v197_v1 }
 0x100   :  { %v140_v9 = vadd.f32 1e-06, %v132_v63  ;;  %168 = vrot.lane.b32.xlu1 %v147_v62, %s482_s0  ;;  %v84_v10 = vpop.permute.xlu0 %83  ;;  %v347_v62 = vadd.f32 1e-06, %v339_v3  ;;  %v206_v63 = vsel %vm198_vm1, %v197_v1, %v190_v22 }
 0x101   :  { %v92_v11 = vsel %vm44_vm0, %v84_v10, %v521_v4 }
 0x102   :  { %v148_v12 = vand.u32 2147483647, %v140_v9  ;;  %v133_v13 = vsub.f32 %v92_v11, %v117_v8  ;;  %v222_v9 = vadd.s32 1, %v33_v54  ;;  %v341_v11 = vsub.f32 %v199_v59, %v544_v7 }
 0x103   :  { %v355_v18 = vand.u32 2147483647, %v347_v62 }
 0x104   :  { %v141_v14 = vadd.f32 1e-06, %v133_v13  ;;  %170 = vrot.lane.b32.xlu0 %v148_v12, %s482_s0  ;;  %v362_v12 = vsel %vm322_vm4, %v354_v58, 0.0  ;;  %v276_v22 = vand.u32 15, %v222_v9  ;;  %v349_v7 = vadd.f32 1e-06, %v341_v11 }
 0x106   :  { %v149_v15 = vand.u32 2147483647, %v141_v14  ;;  %v356_v14 = vand.u32 2147483647, %v348_v6  ;;  %vm326_vm8 = vcmp.ne.s32.totalorder %v276_v22, 0 }
 0x107   :  { %v357_v32 = vand.u32 2147483647, %v349_v7  ;;  %vm334_vm9 = vmand %vm214_vm7, %vm326_vm8 }
 0x108   :  { %172 = vrot.lane.b32.xlu1 %v149_v15, %s482_s0  ;;  %v342_v15 = vsub.f32 %v206_v63, %v521_v4  ;;  %v364_v24 = vsel %vm324_vm6, %v356_v14, 0.0 }
 0x10a   :  { %v350_v25 = vadd.f32 1e-06, %v342_v15 }
 0x10c   :  { %v358_v33 = vand.u32 2147483647, %v350_v25 }
 0x10e   :  { %v366_v41 = vsel %vm334_vm9, %v358_v33, 0.0 }
 0x162   :  { %v159_v40 = vpop.permute.xlu0 %158 }
 0x163   :  { %v182_v52 = vsel %vm93_vm3, %v159_v40, 0.0 }
 0x164   :  { %v368_v60 = vadd.f32 %v351_v49, %v182_v52 }
 0x166   :  { %v161_v50 = vpop.permute.xlu1 %160  ;;  %v163_v57 = vpop.permute.xlu0 %162  ;;  %v377_v16 = vsel %vm376_vm5, %v368_v60, 0.0 }
 0x167   :  { %v183_v53 = vsel %vm93_vm3, %v161_v50, 0.0  ;;  %v184_v8 = vsel %vm93_vm3, %v163_v57, 0.0 }
 0x168   :  { %v369_v55 = vadd.f32 %v360_v44, %v183_v53  ;;  %v370_v17 = vadd.f32 %v353_v56, %v184_v8 }
 0x16a   :  { %v165_v61 = vpop.permute.xlu1 %164  ;;  %v378_v10 = vsel %vm376_vm5, %v369_v55, 0.0  ;;  %v380_v26 = vsel %vm376_vm5, %v370_v17, 0.0 }
 0x16b   :  { %v185_v13 = vsel %vm93_vm3, %v165_v61, 0.0  ;;  %v379_v20 = vadd.f32 %v378_v10, %v377_v16 }
 0x16c   :  { %v371_v23 = vadd.f32 %v362_v12, %v185_v13 }
 0x16d   :  { %v381_v4 = vadd.f32 %v380_v26, %v379_v20 }
 0x16e   :  { %v167_v19 = vpop.permute.xlu0 %166  ;;  %v382_v30 = vsel %vm376_vm5, %v371_v23, 0.0 }
 0x16f   :  { %v186_v21 = vsel %vm93_vm3, %v167_v19, 0.0  ;;  %v383_v36 = vadd.f32 %v382_v30, %v381_v4 }
 0x170   :  { %v372_v27 = vadd.f32 %v355_v18, %v186_v21 }
 0x172   :  { %v169_v28 = vpop.permute.xlu1 %168  ;;  %v384_v34 = vsel %vm376_vm5, %v372_v27, 0.0 }
 0x173   :  { %v187_v29 = vsel %vm93_vm3, %v169_v28, 0.0  ;;  %v385_v40 = vadd.f32 %v384_v34, %v383_v36 }
 0x174   :  { %v373_v31 = vadd.f32 %v364_v24, %v187_v29 }
 0x176   :  { %v171_v2 = vpop.permute.xlu0 %170  ;;  %v386_v38 = vsel %vm376_vm5, %v373_v31, 0.0 }
 0x177   :  { %v188_v37 = vsel %vm93_vm3, %v171_v2, 0.0  ;;  %v387_v43 = vadd.f32 %v386_v38, %v385_v40 }
 0x178   :  { %v374_v39 = vadd.f32 %v357_v32, %v188_v37 }
 0x17a   :  { %v388_v42 = vsel %vm376_vm5, %v374_v39, 0.0  ;;  %v173_v0 = vpop.permute.xlu1 %172 }
 0x17b   :  { %v189_v44 = vsel %vm93_vm3, %v173_v0, 0.0  ;;  %v389_v46 = vadd.f32 %v388_v42, %v387_v43 }
 0x17c   :  { %v375_v45 = vadd.f32 %v366_v41, %v189_v44 }
 0x17e   :  { %v390_v47 = vsel %vm376_vm5, %v375_v45, 0.0 }
 0x17f   :  { %v391_v48 = vadd.f32 %v390_v47, %v389_v46 }
 0x181   :  { %392 = vadd.xlane.f32.xlu0 %v391_v48 }
 0x20e   :  { %v393_v1 = vpop.xlane.xlu0 %392 }
 0x20f   :  { %v394_v49 = vrot.slane %v393_v1, 4 }
 0x211   :  { %v395_v50 = vadd.f32 %v394_v49, %v393_v1 }
 0x213   :  { %v396_v3 = vrot.slane %v395_v50, 2 }
 0x215   :  { %v397_v51 = vadd.f32 %v396_v3, %v395_v50 }
 0x217   :  { %v398_v52 = vrot.slane %v397_v51, 1 }
 0x219   :  { %v399_v53 = vadd.f32 %v398_v52, %v397_v51 }
 0x21b   :  { %462 = vpush %v399_v53 }
 0x24c   :  { %s463_s24 = spop %462 }
 0x24d   :  { %s446_s25 = smul.f32 0.0009765625, %s463_s24 }
 0x24f   :  { %448 = sst [smem:[#allocation4]] %s446_s25 }
 0x250   :  { %477 = shalt.err (!%p474_p2)
}
 0x251   :  { %s483_s4 = smov [#allocation4]  }
 0x252   :  { %456 = dma.smem_to_hbm %s483_s4, 16, %s678_s1, [#allocation5]  }
 0x253   :  { %478 = dma.done.wait [#allocation5], 16  }
 0x254   :  { %479 = vsyncadd [#allocation5], 4294967280 }
 0x255   :  { %460 = sfence }
 0x256   :  { %461 = vsyncpa [#allocation5], 1 }

</bundles_post_ra>
